<compile_context>
chip_gen: v7x
topology: tpu7x:2x2x1
jax: 0.10.0
libtpu: 0.0.40
codegen_flags: <defaults>
</compile_context>

<pallas_src>
import functools

import jax
import jax.numpy as jnp
import numpy as np
from jax.experimental import pallas as pl
from jax.experimental.pallas import tpu as pltpu

EPS = 1e-5  # nn.InstanceNorm2d default


def _residual_block_kernel(H, W, x_ref, border_ref,
                           w1_ref, b1_ref, g1_ref, bt1_ref,
                           w2_ref, b2_ref, g2_ref, bt2_ref, o_ref):
    C = x_ref.shape[1]
    HW = H * W
    inv_hw = jnp.float32(1.0 / HW)

    x = x_ref[0]                                    # (C, HW) f32, H*W on lanes

    # Precomputed border masks (computed once in the wrapper; avoids in-kernel iota div/mod).
    is_w0 = border_ref[0:1, :] > 0.5                # w == 0
    is_wl = border_ref[1:2, :] > 0.5                # w == W-1
    is_h0 = border_ref[2:3, :] > 0.5                # h == 0
    is_hl = border_ref[3:4, :] > 0.5                # h == H-1

    def conv3x3(t, w9_ref, b):
        # t: (Cin, HW). Reflection-padded 3x3 conv. The 9 taps are built with flat lane
        # shifts; values that wrap across the flat boundary are only produced at positions
        # where the boundary `where` selects the reflected value instead, so they are never
        # actually used.
        xl = jnp.roll(t, -1, axis=-1)               # x[., i+1]  (column w+1, interior)
        xr = jnp.roll(t, 1, axis=-1)                # x[., i-1]  (column w-1, interior)
        c_m1 = jnp.where(is_w0, xl, xr)             # column w-1 with reflection (-1 -> 1)
        c_p1 = jnp.where(is_wl, xr, xl)             # column w+1 with reflection (W -> W-2)
        cols = (c_m1, t, c_p1)                      # kx = 0, 1, 2
        top, bot = [], []
        for c in cols:
            up = jnp.roll(c, W, axis=-1)            # row h-1 (interior)
            dn = jnp.roll(c, -W, axis=-1)           # row h+1 (interior)
            top.append(jnp.where(is_h0, dn, up))    # ky = 0 (reflected row -1 -> 1)
            bot.append(jnp.where(is_hl, up, dn))    # ky = 2 (reflected row H -> H-2)
        taps = top + list(cols) + bot               # tap index k = ky*3 + kx

        acc = jnp.zeros(t.shape, jnp.float32)
        for k in range(9):                          # (Cout,Cin) @ (Cin,HW) on the MXU
            acc = acc + jnp.dot(w9_ref[k], taps[k],
                                preferred_element_type=jnp.float32)
        return acc + b

    def inorm(t, g, bt):
        # per-sample, per-channel stats over H*W in a single pass (f32, biased variance)
        s1 = jnp.sum(t, axis=-1, keepdims=True)
        s2 = jnp.sum(t * t, axis=-1, keepdims=True)
        m = s1 * inv_hw
        v = jnp.maximum(s2 * inv_hw - m * m, 0.0)
        return (t - m) * jax.lax.rsqrt(v + EPS) * g + bt

    h = conv3x3(x, w1_ref, b1_ref[...])
    h = jnp.maximum(inorm(h, g1_ref[...], bt1_ref[...]), 0.0)   # ReLU
    h = conv3x3(h, w2_ref, b2_ref[...])
    h = inorm(h, g2_ref[...], bt2_ref[...])
    o_ref[0] = (h + x).astype(o_ref.dtype)


def residual_block_pallas(x_nchw, params):
    N, C, H, W = x_nchw.shape
    HW = H * W
    # NCHW -> (N, C, H*W) is a pure reshape (contiguous), not a transpose.
    x = x_nchw.reshape(N, C, HW).astype(jnp.float32)

    def prep_w(w):   # (Cout, Cin, 3, 3) -> (9, Cout, Cin), tap index k = ky*3 + kx
        return jnp.transpose(w, (2, 3, 0, 1)).reshape(9, C, C).astype(jnp.float32)

    def prep_v(v):   # (C,) -> (C, 1): broadcasts along lanes in the (C, HW) layout
        return v.reshape(C, 1).astype(jnp.float32)

    w1, w2 = prep_w(params['w1']), prep_w(params['w2'])
    b1, b2 = prep_v(params['b1']), prep_v(params['b2'])
    g1, g2 = prep_v(params['g1']), prep_v(params['g2'])
    bt1, bt2 = prep_v(params['beta1']), prep_v(params['beta2'])

    # Border masks for the reflection fix-ups, precomputed on host.
    ii = np.arange(HW)
    col, row = ii % W, ii // W
    border = jnp.asarray(np.stack([col == 0, col == W - 1,
                                   row == 0, row == H - 1]).astype(np.float32))  # (4, HW)

    x_spec = pl.BlockSpec((1, C, HW), lambda n: (n, 0, 0))      # lane-dense in/out blocks
    m_spec = pl.BlockSpec((4, HW), lambda n: (0, 0))
    w_spec = pl.BlockSpec((9, C, C), lambda n: (0, 0, 0))
    v_spec = pl.BlockSpec((C, 1), lambda n: (0, 0))

    out = pl.pallas_call(
        functools.partial(_residual_block_kernel, H, W),
        out_shape=jax.ShapeDtypeStruct((N, C, HW), jnp.float32),
        grid_spec=pltpu.PrefetchScalarGridSpec(
            num_scalar_prefetch=0,
            grid=(N,),
            in_specs=[x_spec, m_spec,
                      w_spec, v_spec, v_spec, v_spec,
                      w_spec, v_spec, v_spec, v_spec],
            out_specs=x_spec,
        ),
        compiler_params=pltpu.CompilerParams(dimension_semantics=("parallel",)),
    )(x, border, w1, b1, g1, bt1, w2, b2, g2, bt2)

    return out.reshape(N, C, H, W)


def residual_block_ref(x, params):
    # pure-JAX reference mirroring the PyTorch module (NCHW)
    def conv(t, w, b):
        tp = jnp.pad(t, ((0, 0), (0, 0), (1, 1), (1, 1)), mode='reflect')
        y = jax.lax.conv_general_dilated(
            tp, w, window_strides=(1, 1), padding='VALID',
            dimension_numbers=('NCHW', 'OIHW', 'NCHW'),
            precision=jax.lax.Precision.HIGHEST)
        return y + b[None, :, None, None]

    def inorm(t, g, bt):
        m = jnp.mean(t, axis=(2, 3), keepdims=True)
        v = jnp.mean(jnp.square(t - m), axis=(2, 3), keepdims=True)
        return (t - m) / jnp.sqrt(v + EPS) * g[None, :, None, None] + bt[None, :, None, None]

    h = jax.nn.relu(inorm(conv(x, params['w1'], params['b1']), params['g1'], params['beta1']))
    h = inorm(conv(h, params['w2'], params['b2']), params['g2'], params['beta2'])
    return h + x


if __name__ == "__main__":
    N, C, H, W = 2, 4, 16, 16
    key = jax.random.PRNGKey(0)
    ks = jax.random.split(key, 9)
    x = jax.random.normal(ks[0], (N, C, H, W), jnp.float32)
    params = dict(
        w1=0.2 * jax.random.normal(ks[1], (C, C, 3, 3), jnp.float32),
        b1=0.1 * jax.random.normal(ks[2], (C,), jnp.float32),
        g1=1.0 + 0.1 * jax.random.normal(ks[3], (C,), jnp.float32),
        beta1=0.1 * jax.random.normal(ks[4], (C,), jnp.float32),
        w2=0.2 * jax.random.normal(ks[5], (C, C, 3, 3), jnp.float32),
        b2=0.1 * jax.random.normal(ks[6], (C,), jnp.float32),
        g2=1.0 + 0.1 * jax.random.normal(ks[7], (C,), jnp.float32),
        beta2=0.1 * jax.random.normal(ks[8], (C,), jnp.float32),
    )

    out = jax.block_until_ready(residual_block_pallas(x, params))
    ref = jax.block_until_ready(residual_block_ref(x, params))
    np.testing.assert_allclose(np.asarray(out), np.asarray(ref), rtol=5e-3, atol=5e-3)
    print("KERNEL_OK")
</pallas_src>

<mosaic_0001>
module attributes {stable_mosaic.version = 11 : i64} {
  func.func @_residual_block_kernel(%arg0: i32, %arg1: memref<1x4x256xf32, #tpu.memory_space<vmem>>, %arg2: memref<4x256xf32, #tpu.memory_space<vmem>>, %arg3: memref<9x4x4xf32, #tpu.memory_space<vmem>>, %arg4: memref<4x1xf32, #tpu.memory_space<vmem>>, %arg5: memref<4x1xf32, #tpu.memory_space<vmem>>, %arg6: memref<4x1xf32, #tpu.memory_space<vmem>>, %arg7: memref<9x4x4xf32, #tpu.memory_space<vmem>>, %arg8: memref<4x1xf32, #tpu.memory_space<vmem>>, %arg9: memref<4x1xf32, #tpu.memory_space<vmem>>, %arg10: memref<4x1xf32, #tpu.memory_space<vmem>>, %arg11: memref<1x4x256xf32, #tpu.memory_space<vmem>>) attributes {dimension_semantics = [#tpu.dimension_semantics<parallel>], iteration_bounds = array<i64: 2>, scalar_prefetch = 0 : i64, scratch_operands = 0 : i64, tpu.core_type = #tpu.core_type<tc>, window_params = [{transform_indices = @transform_0, window_bounds = array<i64: 1, 4, 256>}, {pipeline_mode = #tpu.pipeline_mode<synchronous>, transform_indices = @transform_1, window_bounds = array<i64: 4, 256>}, {pipeline_mode = #tpu.pipeline_mode<synchronous>, transform_indices = @transform_2, window_bounds = array<i64: 9, 4, 4>}, {pipeline_mode = #tpu.pipeline_mode<synchronous>, transform_indices = @transform_3, window_bounds = array<i64: 4, 1>}, {pipeline_mode = #tpu.pipeline_mode<synchronous>, transform_indices = @transform_4, window_bounds = array<i64: 4, 1>}, {pipeline_mode = #tpu.pipeline_mode<synchronous>, transform_indices = @transform_5, window_bounds = array<i64: 4, 1>}, {pipeline_mode = #tpu.pipeline_mode<synchronous>, transform_indices = @transform_6, window_bounds = array<i64: 9, 4, 4>}, {pipeline_mode = #tpu.pipeline_mode<synchronous>, transform_indices = @transform_7, window_bounds = array<i64: 4, 1>}, {pipeline_mode = #tpu.pipeline_mode<synchronous>, transform_indices = @transform_8, window_bounds = array<i64: 4, 1>}, {pipeline_mode = #tpu.pipeline_mode<synchronous>, transform_indices = @transform_9, window_bounds = array<i64: 4, 1>}, {transform_indices = @transform_10, window_bounds = array<i64: 1, 4, 256>}]} {
    %c0 = arith.constant 0 : index
    %c0_0 = arith.constant 0 : index
    %c0_1 = arith.constant 0 : index
    %0 = vector.load %arg1[%c0, %c0_0, %c0_1] : memref<1x4x256xf32, #tpu.memory_space<vmem>>, vector<1x4x256xf32>
    %1 = vector.shape_cast %0 : vector<1x4x256xf32> to vector<4x256xf32>
    %c0_2 = arith.constant 0 : index
    %c0_3 = arith.constant 0 : index
    %2 = vector.load %arg2[%c0_2, %c0_3] : memref<4x256xf32, #tpu.memory_space<vmem>>, vector<1x256xf32>
    %cst = arith.constant 5.000000e-01 : f32
    %3 = vector.broadcast %cst : f32 to vector<1x256xf32>
    %4 = arith.cmpf ogt, %2, %3 : vector<1x256xf32>
    %c1 = arith.constant 1 : index
    %c0_4 = arith.constant 0 : index
    %5 = vector.load %arg2[%c1, %c0_4] : memref<4x256xf32, #tpu.memory_space<vmem>>, vector<1x256xf32>
    %cst_5 = arith.constant 5.000000e-01 : f32
    %6 = vector.broadcast %cst_5 : f32 to vector<1x256xf32>
    %7 = arith.cmpf ogt, %5, %6 : vector<1x256xf32>
    %c2 = arith.constant 2 : index
    %c0_6 = arith.constant 0 : index
    %8 = vector.load %arg2[%c2, %c0_6] : memref<4x256xf32, #tpu.memory_space<vmem>>, vector<1x256xf32>
    %cst_7 = arith.constant 5.000000e-01 : f32
    %9 = vector.broadcast %cst_7 : f32 to vector<1x256xf32>
    %10 = arith.cmpf ogt, %8, %9 : vector<1x256xf32>
    %c3 = arith.constant 3 : index
    %c0_8 = arith.constant 0 : index
    %11 = vector.load %arg2[%c3, %c0_8] : memref<4x256xf32, #tpu.memory_space<vmem>>, vector<1x256xf32>
    %cst_9 = arith.constant 5.000000e-01 : f32
    %12 = vector.broadcast %cst_9 : f32 to vector<1x256xf32>
    %13 = arith.cmpf ogt, %11, %12 : vector<1x256xf32>
    %c0_10 = arith.constant 0 : index
    %c0_11 = arith.constant 0 : index
    %14 = vector.load %arg4[%c0_10, %c0_11] : memref<4x1xf32, #tpu.memory_space<vmem>>, vector<4x1xf32>
    %15 = vector.extract_strided_slice %1 {offsets = [0, 1], sizes = [4, 255], strides = [1, 1]} : vector<4x256xf32> to vector<4x255xf32>
    %16 = vector.extract_strided_slice %1 {offsets = [0, 0], sizes = [4, 1], strides = [1, 1]} : vector<4x256xf32> to vector<4x1xf32>
    %17 = tpu.concatenate %15, %16 in 1 : vector<4x255xf32>, vector<4x1xf32> -> vector<4x256xf32>
    %18 = vector.extract_strided_slice %1 {offsets = [0, 255], sizes = [4, 1], strides = [1, 1]} : vector<4x256xf32> to vector<4x1xf32>
    %19 = vector.extract_strided_slice %1 {offsets = [0, 0], sizes = [4, 255], strides = [1, 1]} : vector<4x256xf32> to vector<4x255xf32>
    %20 = tpu.concatenate %18, %19 in 1 : vector<4x1xf32>, vector<4x255xf32> -> vector<4x256xf32>
    %21 = vector.shape_cast %4 : vector<1x256xi1> to vector<1x256xi1>
    %22 = vector.broadcast %21 : vector<1x256xi1> to vector<4x256xi1>
    %23 = arith.select %22, %17, %20 : vector<4x256xi1>, vector<4x256xf32>
    %24 = vector.shape_cast %7 : vector<1x256xi1> to vector<1x256xi1>
    %25 = vector.broadcast %24 : vector<1x256xi1> to vector<4x256xi1>
    %26 = arith.select %25, %20, %17 : vector<4x256xi1>, vector<4x256xf32>
    %27 = vector.extract_strided_slice %23 {offsets = [0, 240], sizes = [4, 16], strides = [1, 1]} : vector<4x256xf32> to vector<4x16xf32>
    %28 = vector.extract_strided_slice %23 {offsets = [0, 0], sizes = [4, 240], strides = [1, 1]} : vector<4x256xf32> to vector<4x240xf32>
    %29 = tpu.concatenate %27, %28 in 1 : vector<4x16xf32>, vector<4x240xf32> -> vector<4x256xf32>
    %30 = vector.extract_strided_slice %23 {offsets = [0, 16], sizes = [4, 240], strides = [1, 1]} : vector<4x256xf32> to vector<4x240xf32>
    %31 = vector.extract_strided_slice %23 {offsets = [0, 0], sizes = [4, 16], strides = [1, 1]} : vector<4x256xf32> to vector<4x16xf32>
    %32 = tpu.concatenate %30, %31 in 1 : vector<4x240xf32>, vector<4x16xf32> -> vector<4x256xf32>
    %33 = vector.shape_cast %10 : vector<1x256xi1> to vector<1x256xi1>
    %34 = vector.broadcast %33 : vector<1x256xi1> to vector<4x256xi1>
    %35 = arith.select %34, %32, %29 : vector<4x256xi1>, vector<4x256xf32>
    %36 = vector.shape_cast %13 : vector<1x256xi1> to vector<1x256xi1>
    %37 = vector.broadcast %36 : vector<1x256xi1> to vector<4x256xi1>
    %38 = arith.select %37, %29, %32 : vector<4x256xi1>, vector<4x256xf32>
    %39 = vector.extract_strided_slice %1 {offsets = [0, 240], sizes = [4, 16], strides = [1, 1]} : vector<4x256xf32> to vector<4x16xf32>
    %40 = vector.extract_strided_slice %1 {offsets = [0, 0], sizes = [4, 240], strides = [1, 1]} : vector<4x256xf32> to vector<4x240xf32>
    %41 = tpu.concatenate %39, %40 in 1 : vector<4x16xf32>, vector<4x240xf32> -> vector<4x256xf32>
    %42 = vector.extract_strided_slice %1 {offsets = [0, 16], sizes = [4, 240], strides = [1, 1]} : vector<4x256xf32> to vector<4x240xf32>
    %43 = vector.extract_strided_slice %1 {offsets = [0, 0], sizes = [4, 16], strides = [1, 1]} : vector<4x256xf32> to vector<4x16xf32>
    %44 = tpu.concatenate %42, %43 in 1 : vector<4x240xf32>, vector<4x16xf32> -> vector<4x256xf32>
    %45 = vector.shape_cast %10 : vector<1x256xi1> to vector<1x256xi1>
    %46 = vector.broadcast %45 : vector<1x256xi1> to vector<4x256xi1>
    %47 = arith.select %46, %44, %41 : vector<4x256xi1>, vector<4x256xf32>
    %48 = vector.shape_cast %13 : vector<1x256xi1> to vector<1x256xi1>
    %49 = vector.broadcast %48 : vector<1x256xi1> to vector<4x256xi1>
    %50 = arith.select %49, %41, %44 : vector<4x256xi1>, vector<4x256xf32>
    %51 = vector.extract_strided_slice %26 {offsets = [0, 240], sizes = [4, 16], strides = [1, 1]} : vector<4x256xf32> to vector<4x16xf32>
    %52 = vector.extract_strided_slice %26 {offsets = [0, 0], sizes = [4, 240], strides = [1, 1]} : vector<4x256xf32> to vector<4x240xf32>
    %53 = tpu.concatenate %51, %52 in 1 : vector<4x16xf32>, vector<4x240xf32> -> vector<4x256xf32>
    %54 = vector.extract_strided_slice %26 {offsets = [0, 16], sizes = [4, 240], strides = [1, 1]} : vector<4x256xf32> to vector<4x240xf32>
    %55 = vector.extract_strided_slice %26 {offsets = [0, 0], sizes = [4, 16], strides = [1, 1]} : vector<4x256xf32> to vector<4x16xf32>
    %56 = tpu.concatenate %54, %55 in 1 : vector<4x240xf32>, vector<4x16xf32> -> vector<4x256xf32>
    %57 = vector.shape_cast %10 : vector<1x256xi1> to vector<1x256xi1>
    %58 = vector.broadcast %57 : vector<1x256xi1> to vector<4x256xi1>
    %59 = arith.select %58, %56, %53 : vector<4x256xi1>, vector<4x256xf32>
    %60 = vector.shape_cast %13 : vector<1x256xi1> to vector<1x256xi1>
    %61 = vector.broadcast %60 : vector<1x256xi1> to vector<4x256xi1>
    %62 = arith.select %61, %53, %56 : vector<4x256xi1>, vector<4x256xf32>
    %cst_12 = arith.constant 0.000000e+00 : f32
    %63 = vector.broadcast %cst_12 : f32 to vector<4x256xf32>
    %c0_13 = arith.constant 0 : index
    %c0_14 = arith.constant 0 : index
    %c0_15 = arith.constant 0 : index
    %64 = vector.load %arg3[%c0_13, %c0_14, %c0_15] : memref<9x4x4xf32, #tpu.memory_space<vmem>>, vector<1x4x4xf32>
    %65 = vector.shape_cast %64 : vector<1x4x4xf32> to vector<4x4xf32>
    %cst_16 = arith.constant dense<0.000000e+00> : vector<4x256xf32>
    %66 = tpu.matmul %65, %35, %cst_16 {dimension_numbers = #tpu.dot_dimension_numbers<[1], [0], [0], [1], [0, 0, 1, 1], [], []>} : vector<4x4xf32>, vector<4x256xf32>, vector<4x256xf32> -> vector<4x256xf32>
    %67 = arith.addf %63, %66 : vector<4x256xf32>
    %c1_17 = arith.constant 1 : index
    %c0_18 = arith.constant 0 : index
    %c0_19 = arith.constant 0 : index
    %68 = vector.load %arg3[%c1_17, %c0_18, %c0_19] : memref<9x4x4xf32, #tpu.memory_space<vmem>>, vector<1x4x4xf32>
    %69 = vector.shape_cast %68 : vector<1x4x4xf32> to vector<4x4xf32>
    %cst_20 = arith.constant dense<0.000000e+00> : vector<4x256xf32>
    %70 = tpu.matmul %69, %47, %cst_20 {dimension_numbers = #tpu.dot_dimension_numbers<[1], [0], [0], [1], [0, 0, 1, 1], [], []>} : vector<4x4xf32>, vector<4x256xf32>, vector<4x256xf32> -> vector<4x256xf32>
    %71 = arith.addf %67, %70 : vector<4x256xf32>
    %c2_21 = arith.constant 2 : index
    %c0_22 = arith.constant 0 : index
    %c0_23 = arith.constant 0 : index
    %72 = vector.load %arg3[%c2_21, %c0_22, %c0_23] : memref<9x4x4xf32, #tpu.memory_space<vmem>>, vector<1x4x4xf32>
    %73 = vector.shape_cast %72 : vector<1x4x4xf32> to vector<4x4xf32>
    %cst_24 = arith.constant dense<0.000000e+00> : vector<4x256xf32>
    %74 = tpu.matmul %73, %59, %cst_24 {dimension_numbers = #tpu.dot_dimension_numbers<[1], [0], [0], [1], [0, 0, 1, 1], [], []>} : vector<4x4xf32>, vector<4x256xf32>, vector<4x256xf32> -> vector<4x256xf32>
    %75 = arith.addf %71, %74 : vector<4x256xf32>
    %c3_25 = arith.constant 3 : index
    %c0_26 = arith.constant 0 : index
    %c0_27 = arith.constant 0 : index
    %76 = vector.load %arg3[%c3_25, %c0_26, %c0_27] : memref<9x4x4xf32, #tpu.memory_space<vmem>>, vector<1x4x4xf32>
    %77 = vector.shape_cast %76 : vector<1x4x4xf32> to vector<4x4xf32>
    %cst_28 = arith.constant dense<0.000000e+00> : vector<4x256xf32>
    %78 = tpu.matmul %77, %23, %cst_28 {dimension_numbers = #tpu.dot_dimension_numbers<[1], [0], [0], [1], [0, 0, 1, 1], [], []>} : vector<4x4xf32>, vector<4x256xf32>, vector<4x256xf32> -> vector<4x256xf32>
    %79 = arith.addf %75, %78 : vector<4x256xf32>
    %c4 = arith.constant 4 : index
    %c0_29 = arith.constant 0 : index
    %c0_30 = arith.constant 0 : index
    %80 = vector.load %arg3[%c4, %c0_29, %c0_30] : memref<9x4x4xf32, #tpu.memory_space<vmem>>, vector<1x4x4xf32>
    %81 = vector.shape_cast %80 : vector<1x4x4xf32> to vector<4x4xf32>
    %cst_31 = arith.constant dense<0.000000e+00> : vector<4x256xf32>
    %82 = tpu.matmul %81, %1, %cst_31 {dimension_numbers = #tpu.dot_dimension_numbers<[1], [0], [0], [1], [0, 0, 1, 1], [], []>} : vector<4x4xf32>, vector<4x256xf32>, vector<4x256xf32> -> vector<4x256xf32>
    %83 = arith.addf %79, %82 : vector<4x256xf32>
    %c5 = arith.constant 5 : index
    %c0_32 = arith.constant 0 : index
    %c0_33 = arith.constant 0 : index
    %84 = vector.load %arg3[%c5, %c0_32, %c0_33] : memref<9x4x4xf32, #tpu.memory_space<vmem>>, vector<1x4x4xf32>
    %85 = vector.shape_cast %84 : vector<1x4x4xf32> to vector<4x4xf32>
    %cst_34 = arith.constant dense<0.000000e+00> : vector<4x256xf32>
    %86 = tpu.matmul %85, %26, %cst_34 {dimension_numbers = #tpu.dot_dimension_numbers<[1], [0], [0], [1], [0, 0, 1, 1], [], []>} : vector<4x4xf32>, vector<4x256xf32>, vector<4x256xf32> -> vector<4x256xf32>
    %87 = arith.addf %83, %86 : vector<4x256xf32>
    %c6 = arith.constant 6 : index
    %c0_35 = arith.constant 0 : index
    %c0_36 = arith.constant 0 : index
    %88 = vector.load %arg3[%c6, %c0_35, %c0_36] : memref<9x4x4xf32, #tpu.memory_space<vmem>>, vector<1x4x4xf32>
    %89 = vector.shape_cast %88 : vector<1x4x4xf32> to vector<4x4xf32>
    %cst_37 = arith.constant dense<0.000000e+00> : vector<4x256xf32>
    %90 = tpu.matmul %89, %38, %cst_37 {dimension_numbers = #tpu.dot_dimension_numbers<[1], [0], [0], [1], [0, 0, 1, 1], [], []>} : vector<4x4xf32>, vector<4x256xf32>, vector<4x256xf32> -> vector<4x256xf32>
    %91 = arith.addf %87, %90 : vector<4x256xf32>
    %c7 = arith.constant 7 : index
    %c0_38 = arith.constant 0 : index
    %c0_39 = arith.constant 0 : index
    %92 = vector.load %arg3[%c7, %c0_38, %c0_39] : memref<9x4x4xf32, #tpu.memory_space<vmem>>, vector<1x4x4xf32>
    %93 = vector.shape_cast %92 : vector<1x4x4xf32> to vector<4x4xf32>
    %cst_40 = arith.constant dense<0.000000e+00> : vector<4x256xf32>
    %94 = tpu.matmul %93, %50, %cst_40 {dimension_numbers = #tpu.dot_dimension_numbers<[1], [0], [0], [1], [0, 0, 1, 1], [], []>} : vector<4x4xf32>, vector<4x256xf32>, vector<4x256xf32> -> vector<4x256xf32>
    %95 = arith.addf %91, %94 : vector<4x256xf32>
    %c8 = arith.constant 8 : index
    %c0_41 = arith.constant 0 : index
    %c0_42 = arith.constant 0 : index
    %96 = vector.load %arg3[%c8, %c0_41, %c0_42] : memref<9x4x4xf32, #tpu.memory_space<vmem>>, vector<1x4x4xf32>
    %97 = vector.shape_cast %96 : vector<1x4x4xf32> to vector<4x4xf32>
    %cst_43 = arith.constant dense<0.000000e+00> : vector<4x256xf32>
    %98 = tpu.matmul %97, %62, %cst_43 {dimension_numbers = #tpu.dot_dimension_numbers<[1], [0], [0], [1], [0, 0, 1, 1], [], []>} : vector<4x4xf32>, vector<4x256xf32>, vector<4x256xf32> -> vector<4x256xf32>
    %99 = arith.addf %95, %98 : vector<4x256xf32>
    %100 = vector.broadcast %14 : vector<4x1xf32> to vector<4x256xf32>
    %101 = arith.addf %99, %100 : vector<4x256xf32>
    %c0_44 = arith.constant 0 : index
    %c0_45 = arith.constant 0 : index
    %102 = vector.load %arg5[%c0_44, %c0_45] : memref<4x1xf32, #tpu.memory_space<vmem>>, vector<4x1xf32>
    %c0_46 = arith.constant 0 : index
    %c0_47 = arith.constant 0 : index
    %103 = vector.load %arg6[%c0_46, %c0_47] : memref<4x1xf32, #tpu.memory_space<vmem>>, vector<4x1xf32>
    %cst_48 = arith.constant dense<0.000000e+00> : vector<4xf32>
    %104 = vector.multi_reduction <add>, %101, %cst_48 [1] : vector<4x256xf32> to vector<4xf32>
    %105 = vector.shape_cast %104 : vector<4xf32> to vector<4x1xf32>
    %106 = arith.mulf %101, %101 : vector<4x256xf32>
    %cst_49 = arith.constant dense<0.000000e+00> : vector<4xf32>
    %107 = vector.multi_reduction <add>, %106, %cst_49 [1] : vector<4x256xf32> to vector<4xf32>
    %108 = vector.shape_cast %107 : vector<4xf32> to vector<4x1xf32>
    %cst_50 = arith.constant 3.906250e-03 : f32
    %109 = vector.broadcast %cst_50 : f32 to vector<4x1xf32>
    %110 = arith.mulf %105, %109 : vector<4x1xf32>
    %cst_51 = arith.constant 3.906250e-03 : f32
    %111 = vector.broadcast %cst_51 : f32 to vector<4x1xf32>
    %112 = arith.mulf %108, %111 : vector<4x1xf32>
    %113 = arith.mulf %110, %110 : vector<4x1xf32>
    %114 = arith.subf %112, %113 : vector<4x1xf32>
    %cst_52 = arith.constant 0.000000e+00 : f32
    %115 = vector.broadcast %cst_52 : f32 to vector<4x1xf32>
    %116 = arith.maximumf %114, %115 : vector<4x1xf32>
    %117 = vector.broadcast %110 : vector<4x1xf32> to vector<4x256xf32>
    %118 = arith.subf %101, %117 : vector<4x256xf32>
    %cst_53 = arith.constant 9.99999974E-6 : f32
    %119 = vector.broadcast %cst_53 : f32 to vector<4x1xf32>
    %120 = arith.addf %116, %119 : vector<4x1xf32>
    %121 = math.rsqrt %120 : vector<4x1xf32>
    %122 = vector.broadcast %121 : vector<4x1xf32> to vector<4x256xf32>
    %123 = arith.mulf %118, %122 : vector<4x256xf32>
    %124 = vector.broadcast %102 : vector<4x1xf32> to vector<4x256xf32>
    %125 = arith.mulf %123, %124 : vector<4x256xf32>
    %126 = vector.broadcast %103 : vector<4x1xf32> to vector<4x256xf32>
    %127 = arith.addf %125, %126 : vector<4x256xf32>
    %cst_54 = arith.constant 0.000000e+00 : f32
    %128 = vector.broadcast %cst_54 : f32 to vector<4x256xf32>
    %129 = arith.maximumf %127, %128 : vector<4x256xf32>
    %c0_55 = arith.constant 0 : index
    %c0_56 = arith.constant 0 : index
    %130 = vector.load %arg8[%c0_55, %c0_56] : memref<4x1xf32, #tpu.memory_space<vmem>>, vector<4x1xf32>
    %131 = vector.extract_strided_slice %129 {offsets = [0, 1], sizes = [4, 255], strides = [1, 1]} : vector<4x256xf32> to vector<4x255xf32>
    %132 = vector.extract_strided_slice %129 {offsets = [0, 0], sizes = [4, 1], strides = [1, 1]} : vector<4x256xf32> to vector<4x1xf32>
    %133 = tpu.concatenate %131, %132 in 1 : vector<4x255xf32>, vector<4x1xf32> -> vector<4x256xf32>
    %134 = vector.extract_strided_slice %129 {offsets = [0, 255], sizes = [4, 1], strides = [1, 1]} : vector<4x256xf32> to vector<4x1xf32>
    %135 = vector.extract_strided_slice %129 {offsets = [0, 0], sizes = [4, 255], strides = [1, 1]} : vector<4x256xf32> to vector<4x255xf32>
    %136 = tpu.concatenate %134, %135 in 1 : vector<4x1xf32>, vector<4x255xf32> -> vector<4x256xf32>
    %137 = vector.shape_cast %4 : vector<1x256xi1> to vector<1x256xi1>
    %138 = vector.broadcast %137 : vector<1x256xi1> to vector<4x256xi1>
    %139 = arith.select %138, %133, %136 : vector<4x256xi1>, vector<4x256xf32>
    %140 = vector.shape_cast %7 : vector<1x256xi1> to vector<1x256xi1>
    %141 = vector.broadcast %140 : vector<1x256xi1> to vector<4x256xi1>
    %142 = arith.select %141, %136, %133 : vector<4x256xi1>, vector<4x256xf32>
    %143 = vector.extract_strided_slice %139 {offsets = [0, 240], sizes = [4, 16], strides = [1, 1]} : vector<4x256xf32> to vector<4x16xf32>
    %144 = vector.extract_strided_slice %139 {offsets = [0, 0], sizes = [4, 240], strides = [1, 1]} : vector<4x256xf32> to vector<4x240xf32>
    %145 = tpu.concatenate %143, %144 in 1 : vector<4x16xf32>, vector<4x240xf32> -> vector<4x256xf32>
    %146 = vector.extract_strided_slice %139 {offsets = [0, 16], sizes = [4, 240], strides = [1, 1]} : vector<4x256xf32> to vector<4x240xf32>
    %147 = vector.extract_strided_slice %139 {offsets = [0, 0], sizes = [4, 16], strides = [1, 1]} : vector<4x256xf32> to vector<4x16xf32>
    %148 = tpu.concatenate %146, %147 in 1 : vector<4x240xf32>, vector<4x16xf32> -> vector<4x256xf32>
    %149 = vector.shape_cast %10 : vector<1x256xi1> to vector<1x256xi1>
    %150 = vector.broadcast %149 : vector<1x256xi1> to vector<4x256xi1>
    %151 = arith.select %150, %148, %145 : vector<4x256xi1>, vector<4x256xf32>
    %152 = vector.shape_cast %13 : vector<1x256xi1> to vector<1x256xi1>
    %153 = vector.broadcast %152 : vector<1x256xi1> to vector<4x256xi1>
    %154 = arith.select %153, %145, %148 : vector<4x256xi1>, vector<4x256xf32>
    %155 = vector.extract_strided_slice %129 {offsets = [0, 240], sizes = [4, 16], strides = [1, 1]} : vector<4x256xf32> to vector<4x16xf32>
    %156 = vector.extract_strided_slice %129 {offsets = [0, 0], sizes = [4, 240], strides = [1, 1]} : vector<4x256xf32> to vector<4x240xf32>
    %157 = tpu.concatenate %155, %156 in 1 : vector<4x16xf32>, vector<4x240xf32> -> vector<4x256xf32>
    %158 = vector.extract_strided_slice %129 {offsets = [0, 16], sizes = [4, 240], strides = [1, 1]} : vector<4x256xf32> to vector<4x240xf32>
    %159 = vector.extract_strided_slice %129 {offsets = [0, 0], sizes = [4, 16], strides = [1, 1]} : vector<4x256xf32> to vector<4x16xf32>
    %160 = tpu.concatenate %158, %159 in 1 : vector<4x240xf32>, vector<4x16xf32> -> vector<4x256xf32>
    %161 = vector.shape_cast %10 : vector<1x256xi1> to vector<1x256xi1>
    %162 = vector.broadcast %161 : vector<1x256xi1> to vector<4x256xi1>
    %163 = arith.select %162, %160, %157 : vector<4x256xi1>, vector<4x256xf32>
    %164 = vector.shape_cast %13 : vector<1x256xi1> to vector<1x256xi1>
    %165 = vector.broadcast %164 : vector<1x256xi1> to vector<4x256xi1>
    %166 = arith.select %165, %157, %160 : vector<4x256xi1>, vector<4x256xf32>
    %167 = vector.extract_strided_slice %142 {offsets = [0, 240], sizes = [4, 16], strides = [1, 1]} : vector<4x256xf32> to vector<4x16xf32>
    %168 = vector.extract_strided_slice %142 {offsets = [0, 0], sizes = [4, 240], strides = [1, 1]} : vector<4x256xf32> to vector<4x240xf32>
    %169 = tpu.concatenate %167, %168 in 1 : vector<4x16xf32>, vector<4x240xf32> -> vector<4x256xf32>
    %170 = vector.extract_strided_slice %142 {offsets = [0, 16], sizes = [4, 240], strides = [1, 1]} : vector<4x256xf32> to vector<4x240xf32>
    %171 = vector.extract_strided_slice %142 {offsets = [0, 0], sizes = [4, 16], strides = [1, 1]} : vector<4x256xf32> to vector<4x16xf32>
    %172 = tpu.concatenate %170, %171 in 1 : vector<4x240xf32>, vector<4x16xf32> -> vector<4x256xf32>
    %173 = vector.shape_cast %10 : vector<1x256xi1> to vector<1x256xi1>
    %174 = vector.broadcast %173 : vector<1x256xi1> to vector<4x256xi1>
    %175 = arith.select %174, %172, %169 : vector<4x256xi1>, vector<4x256xf32>
    %176 = vector.shape_cast %13 : vector<1x256xi1> to vector<1x256xi1>
    %177 = vector.broadcast %176 : vector<1x256xi1> to vector<4x256xi1>
    %178 = arith.select %177, %169, %172 : vector<4x256xi1>, vector<4x256xf32>
    %cst_57 = arith.constant 0.000000e+00 : f32
    %179 = vector.broadcast %cst_57 : f32 to vector<4x256xf32>
    %c0_58 = arith.constant 0 : index
    %c0_59 = arith.constant 0 : index
    %c0_60 = arith.constant 0 : index
    %180 = vector.load %arg7[%c0_58, %c0_59, %c0_60] : memref<9x4x4xf32, #tpu.memory_space<vmem>>, vector<1x4x4xf32>
    %181 = vector.shape_cast %180 : vector<1x4x4xf32> to vector<4x4xf32>
    %cst_61 = arith.constant dense<0.000000e+00> : vector<4x256xf32>
    %182 = tpu.matmul %181, %151, %cst_61 {dimension_numbers = #tpu.dot_dimension_numbers<[1], [0], [0], [1], [0, 0, 1, 1], [], []>} : vector<4x4xf32>, vector<4x256xf32>, vector<4x256xf32> -> vector<4x256xf32>
    %183 = arith.addf %179, %182 : vector<4x256xf32>
    %c1_62 = arith.constant 1 : index
    %c0_63 = arith.constant 0 : index
    %c0_64 = arith.constant 0 : index
    %184 = vector.load %arg7[%c1_62, %c0_63, %c0_64] : memref<9x4x4xf32, #tpu.memory_space<vmem>>, vector<1x4x4xf32>
    %185 = vector.shape_cast %184 : vector<1x4x4xf32> to vector<4x4xf32>
    %cst_65 = arith.constant dense<0.000000e+00> : vector<4x256xf32>
    %186 = tpu.matmul %185, %163, %cst_65 {dimension_numbers = #tpu.dot_dimension_numbers<[1], [0], [0], [1], [0, 0, 1, 1], [], []>} : vector<4x4xf32>, vector<4x256xf32>, vector<4x256xf32> -> vector<4x256xf32>
    %187 = arith.addf %183, %186 : vector<4x256xf32>
    %c2_66 = arith.constant 2 : index
    %c0_67 = arith.constant 0 : index
    %c0_68 = arith.constant 0 : index
    %188 = vector.load %arg7[%c2_66, %c0_67, %c0_68] : memref<9x4x4xf32, #tpu.memory_space<vmem>>, vector<1x4x4xf32>
    %189 = vector.shape_cast %188 : vector<1x4x4xf32> to vector<4x4xf32>
    %cst_69 = arith.constant dense<0.000000e+00> : vector<4x256xf32>
    %190 = tpu.matmul %189, %175, %cst_69 {dimension_numbers = #tpu.dot_dimension_numbers<[1], [0], [0], [1], [0, 0, 1, 1], [], []>} : vector<4x4xf32>, vector<4x256xf32>, vector<4x256xf32> -> vector<4x256xf32>
    %191 = arith.addf %187, %190 : vector<4x256xf32>
    %c3_70 = arith.constant 3 : index
    %c0_71 = arith.constant 0 : index
    %c0_72 = arith.constant 0 : index
    %192 = vector.load %arg7[%c3_70, %c0_71, %c0_72] : memref<9x4x4xf32, #tpu.memory_space<vmem>>, vector<1x4x4xf32>
    %193 = vector.shape_cast %192 : vector<1x4x4xf32> to vector<4x4xf32>
    %cst_73 = arith.constant dense<0.000000e+00> : vector<4x256xf32>
    %194 = tpu.matmul %193, %139, %cst_73 {dimension_numbers = #tpu.dot_dimension_numbers<[1], [0], [0], [1], [0, 0, 1, 1], [], []>} : vector<4x4xf32>, vector<4x256xf32>, vector<4x256xf32> -> vector<4x256xf32>
    %195 = arith.addf %191, %194 : vector<4x256xf32>
    %c4_74 = arith.constant 4 : index
    %c0_75 = arith.constant 0 : index
    %c0_76 = arith.constant 0 : index
    %196 = vector.load %arg7[%c4_74, %c0_75, %c0_76] : memref<9x4x4xf32, #tpu.memory_space<vmem>>, vector<1x4x4xf32>
    %197 = vector.shape_cast %196 : vector<1x4x4xf32> to vector<4x4xf32>
    %cst_77 = arith.constant dense<0.000000e+00> : vector<4x256xf32>
    %198 = tpu.matmul %197, %129, %cst_77 {dimension_numbers = #tpu.dot_dimension_numbers<[1], [0], [0], [1], [0, 0, 1, 1], [], []>} : vector<4x4xf32>, vector<4x256xf32>, vector<4x256xf32> -> vector<4x256xf32>
    %199 = arith.addf %195, %198 : vector<4x256xf32>
    %c5_78 = arith.constant 5 : index
    %c0_79 = arith.constant 0 : index
    %c0_80 = arith.constant 0 : index
    %200 = vector.load %arg7[%c5_78, %c0_79, %c0_80] : memref<9x4x4xf32, #tpu.memory_space<vmem>>, vector<1x4x4xf32>
    %201 = vector.shape_cast %200 : vector<1x4x4xf32> to vector<4x4xf32>
    %cst_81 = arith.constant dense<0.000000e+00> : vector<4x256xf32>
    %202 = tpu.matmul %201, %142, %cst_81 {dimension_numbers = #tpu.dot_dimension_numbers<[1], [0], [0], [1], [0, 0, 1, 1], [], []>} : vector<4x4xf32>, vector<4x256xf32>, vector<4x256xf32> -> vector<4x256xf32>
    %203 = arith.addf %199, %202 : vector<4x256xf32>
    %c6_82 = arith.constant 6 : index
    %c0_83 = arith.constant 0 : index
    %c0_84 = arith.constant 0 : index
    %204 = vector.load %arg7[%c6_82, %c0_83, %c0_84] : memref<9x4x4xf32, #tpu.memory_space<vmem>>, vector<1x4x4xf32>
    %205 = vector.shape_cast %204 : vector<1x4x4xf32> to vector<4x4xf32>
    %cst_85 = arith.constant dense<0.000000e+00> : vector<4x256xf32>
    %206 = tpu.matmul %205, %154, %cst_85 {dimension_numbers = #tpu.dot_dimension_numbers<[1], [0], [0], [1], [0, 0, 1, 1], [], []>} : vector<4x4xf32>, vector<4x256xf32>, vector<4x256xf32> -> vector<4x256xf32>
    %207 = arith.addf %203, %206 : vector<4x256xf32>
    %c7_86 = arith.constant 7 : index
    %c0_87 = arith.constant 0 : index
    %c0_88 = arith.constant 0 : index
    %208 = vector.load %arg7[%c7_86, %c0_87, %c0_88] : memref<9x4x4xf32, #tpu.memory_space<vmem>>, vector<1x4x4xf32>
    %209 = vector.shape_cast %208 : vector<1x4x4xf32> to vector<4x4xf32>
    %cst_89 = arith.constant dense<0.000000e+00> : vector<4x256xf32>
    %210 = tpu.matmul %209, %166, %cst_89 {dimension_numbers = #tpu.dot_dimension_numbers<[1], [0], [0], [1], [0, 0, 1, 1], [], []>} : vector<4x4xf32>, vector<4x256xf32>, vector<4x256xf32> -> vector<4x256xf32>
    %211 = arith.addf %207, %210 : vector<4x256xf32>
    %c8_90 = arith.constant 8 : index
    %c0_91 = arith.constant 0 : index
    %c0_92 = arith.constant 0 : index
    %212 = vector.load %arg7[%c8_90, %c0_91, %c0_92] : memref<9x4x4xf32, #tpu.memory_space<vmem>>, vector<1x4x4xf32>
    %213 = vector.shape_cast %212 : vector<1x4x4xf32> to vector<4x4xf32>
    %cst_93 = arith.constant dense<0.000000e+00> : vector<4x256xf32>
    %214 = tpu.matmul %213, %178, %cst_93 {dimension_numbers = #tpu.dot_dimension_numbers<[1], [0], [0], [1], [0, 0, 1, 1], [], []>} : vector<4x4xf32>, vector<4x256xf32>, vector<4x256xf32> -> vector<4x256xf32>
    %215 = arith.addf %211, %214 : vector<4x256xf32>
    %216 = vector.broadcast %130 : vector<4x1xf32> to vector<4x256xf32>
    %217 = arith.addf %215, %216 : vector<4x256xf32>
    %c0_94 = arith.constant 0 : index
    %c0_95 = arith.constant 0 : index
    %218 = vector.load %arg9[%c0_94, %c0_95] : memref<4x1xf32, #tpu.memory_space<vmem>>, vector<4x1xf32>
    %c0_96 = arith.constant 0 : index
    %c0_97 = arith.constant 0 : index
    %219 = vector.load %arg10[%c0_96, %c0_97] : memref<4x1xf32, #tpu.memory_space<vmem>>, vector<4x1xf32>
    %cst_98 = arith.constant dense<0.000000e+00> : vector<4xf32>
    %220 = vector.multi_reduction <add>, %217, %cst_98 [1] : vector<4x256xf32> to vector<4xf32>
    %221 = vector.shape_cast %220 : vector<4xf32> to vector<4x1xf32>
    %222 = arith.mulf %217, %217 : vector<4x256xf32>
    %cst_99 = arith.constant dense<0.000000e+00> : vector<4xf32>
    %223 = vector.multi_reduction <add>, %222, %cst_99 [1] : vector<4x256xf32> to vector<4xf32>
    %224 = vector.shape_cast %223 : vector<4xf32> to vector<4x1xf32>
    %cst_100 = arith.constant 3.906250e-03 : f32
    %225 = vector.broadcast %cst_100 : f32 to vector<4x1xf32>
    %226 = arith.mulf %221, %225 : vector<4x1xf32>
    %cst_101 = arith.constant 3.906250e-03 : f32
    %227 = vector.broadcast %cst_101 : f32 to vector<4x1xf32>
    %228 = arith.mulf %224, %227 : vector<4x1xf32>
    %229 = arith.mulf %226, %226 : vector<4x1xf32>
    %230 = arith.subf %228, %229 : vector<4x1xf32>
    %cst_102 = arith.constant 0.000000e+00 : f32
    %231 = vector.broadcast %cst_102 : f32 to vector<4x1xf32>
    %232 = arith.maximumf %230, %231 : vector<4x1xf32>
    %233 = vector.broadcast %226 : vector<4x1xf32> to vector<4x256xf32>
    %234 = arith.subf %217, %233 : vector<4x256xf32>
    %cst_103 = arith.constant 9.99999974E-6 : f32
    %235 = vector.broadcast %cst_103 : f32 to vector<4x1xf32>
    %236 = arith.addf %232, %235 : vector<4x1xf32>
    %237 = math.rsqrt %236 : vector<4x1xf32>
    %238 = vector.broadcast %237 : vector<4x1xf32> to vector<4x256xf32>
    %239 = arith.mulf %234, %238 : vector<4x256xf32>
    %240 = vector.broadcast %218 : vector<4x1xf32> to vector<4x256xf32>
    %241 = arith.mulf %239, %240 : vector<4x256xf32>
    %242 = vector.broadcast %219 : vector<4x1xf32> to vector<4x256xf32>
    %243 = arith.addf %241, %242 : vector<4x256xf32>
    %244 = arith.addf %243, %1 : vector<4x256xf32>
    %c0_104 = arith.constant 0 : index
    %c0_105 = arith.constant 0 : index
    %c0_106 = arith.constant 0 : index
    %245 = vector.load %arg11[%c0_104, %c0_105, %c0_106] : memref<1x4x256xf32, #tpu.memory_space<vmem>>, vector<1x4x256xf32>
    %246 = vector.shape_cast %245 : vector<1x4x256xf32> to vector<4x256xf32>
    %247 = vector.shape_cast %244 : vector<4x256xf32> to vector<1x4x256xf32>
    tpu.vector_store %arg11[%c0_104, %c0_105, %c0_106], %247 {strides = array<i32>} : memref<1x4x256xf32, #tpu.memory_space<vmem>>, vector<1x4x256xf32>,
    return
  }
  func.func @transform_0(%arg0: i32) -> (i32, i32, i32) {
    %c0_i32 = arith.constant 0 : i32
    %c0_i32_0 = arith.constant 0 : i32
    %c0_i32_1 = arith.constant 0 : i32
    return %arg0, %c0_i32, %c0_i32_0 : i32, i32, i32
  }
  func.func @transform_1(%arg0: i32) -> (i32, i32) {
    %c0_i32 = arith.constant 0 : i32
    %c0_i32_0 = arith.constant 0 : i32
    %c0_i32_1 = arith.constant 0 : i32
    return %c0_i32, %c0_i32_0 : i32, i32
  }
  func.func @transform_2(%arg0: i32) -> (i32, i32, i32) {
    %c0_i32 = arith.constant 0 : i32
    %c0_i32_0 = arith.constant 0 : i32
    %c0_i32_1 = arith.constant 0 : i32
    %c0_i32_2 = arith.constant 0 : i32
    return %c0_i32, %c0_i32_0, %c0_i32_1 : i32, i32, i32
  }
  func.func @transform_3(%arg0: i32) -> (i32, i32) {
    %c0_i32 = arith.constant 0 : i32
    %c0_i32_0 = arith.constant 0 : i32
    %c0_i32_1 = arith.constant 0 : i32
    return %c0_i32, %c0_i32_0 : i32, i32
  }
  func.func @transform_4(%arg0: i32) -> (i32, i32) {
    %c0_i32 = arith.constant 0 : i32
    %c0_i32_0 = arith.constant 0 : i32
    %c0_i32_1 = arith.constant 0 : i32
    return %c0_i32, %c0_i32_0 : i32, i32
  }
  func.func @transform_5(%arg0: i32) -> (i32, i32) {
    %c0_i32 = arith.constant 0 : i32
    %c0_i32_0 = arith.constant 0 : i32
    %c0_i32_1 = arith.constant 0 : i32
    return %c0_i32, %c0_i32_0 : i32, i32
  }
  func.func @transform_6(%arg0: i32) -> (i32, i32, i32) {
    %c0_i32 = arith.constant 0 : i32
    %c0_i32_0 = arith.constant 0 : i32
    %c0_i32_1 = arith.constant 0 : i32
    %c0_i32_2 = arith.constant 0 : i32
    return %c0_i32, %c0_i32_0, %c0_i32_1 : i32, i32, i32
  }
  func.func @transform_7(%arg0: i32) -> (i32, i32) {
    %c0_i32 = arith.constant 0 : i32
    %c0_i32_0 = arith.constant 0 : i32
    %c0_i32_1 = arith.constant 0 : i32
    return %c0_i32, %c0_i32_0 : i32, i32
  }
  func.func @transform_8(%arg0: i32) -> (i32, i32) {
    %c0_i32 = arith.constant 0 : i32
    %c0_i32_0 = arith.constant 0 : i32
    %c0_i32_1 = arith.constant 0 : i32
    return %c0_i32, %c0_i32_0 : i32, i32
  }
  func.func @transform_9(%arg0: i32) -> (i32, i32) {
    %c0_i32 = arith.constant 0 : i32
    %c0_i32_0 = arith.constant 0 : i32
    %c0_i32_1 = arith.constant 0 : i32
    return %c0_i32, %c0_i32_0 : i32, i32
  }
  func.func @transform_10(%arg0: i32) -> (i32, i32, i32) {
    %c0_i32 = arith.constant 0 : i32
    %c0_i32_0 = arith.constant 0 : i32
    %c0_i32_1 = arith.constant 0 : i32
    return %arg0, %c0_i32, %c0_i32_0 : i32, i32, i32
  }
}

</mosaic_0001>

<bundles_post_ra>
// kernel: tpu_custom_call.1
= control target key start
LH: loop header
LB: loop body
LE: loop exit
PB: predicated region body
PF: predicated region fallthrough
CT: control target
= control target key end

     0   :  { %15 = vsyncpa [#allocation3], 0  ;;  %s3081_s0 = inlined_call_operand.vmem [shape: f32[2,4,256], index: 0, kind: input, shape index: {}]   ;;  %s3082_s1 = inlined_call_operand.vmem [shape: f32[4,256], index: 1, kind: input, shape index: {}]   ;;  %s3083_s2 = inlined_call_operand.vmem [shape: f32[9,4,4], index: 2, kind: input, shape index: {}]   ;;  %s3084_s3 = inlined_call_operand.vmem [shape: f32[4,1], index: 3, kind: input, shape index: {}]   ;;  %s3085_s4 = inlined_call_operand.vmem [shape: f32[4,1], index: 4, kind: input, shape index: {}]   ;;  %s3086_s5 = inlined_call_operand.vmem [shape: f32[4,1], index: 5, kind: input, shape index: {}]   ;;  %s3087_s6 = inlined_call_operand.vmem [shape: f32[9,4,4], index: 6, kind: input, shape index: {}]   ;;  %s3088_s7 = inlined_call_operand.vmem [shape: f32[4,1], index: 7, kind: input, shape index: {}]   ;;  %s3089_s8 = inlined_call_operand.vmem [shape: f32[4,1], index: 8, kind: input, shape index: {}]   ;;  %s3090_s9 = inlined_call_operand.vmem [shape: f32[4,1], index: 9, kind: input, shape index: {}]   ;;  %s3091_s10 = inlined_call_operand.hbm [shape: f32[2,4,256], index: 10, kind: output, shape index: {}]  }
   0x1   :  { %17 = vsyncpa [#allocation3 + $0x1], 0  ;;  %s2573_s13 = smov 0   ;;  %s2575_s14 = smov 0  }
   0x2   :  { %s2577_s15 = smov 0   ;;  %s2579_s16 = smov 0  }
   0x3 LB: > { %s2594_s17 = sadd.s32 4294967295, %s2509_s16   ;;  %s2276_s18 = sadd.s32 4294967294, %s2509_s16   ;;  %s2509_s16 = sphi %s2579_s16, %s3113_s16   ;;  %s2505_s15 = sphi %s2577_s15, %s3112_s15   ;;  %s2501_s14 = sphi %s2575_s14, %s3111_s14   ;;  %s2497_s13 = sphi %s2573_s13, %s3110_s13  }
   0x4   : > { %s2598_s19 = sadd.s32 1, %s2509_s16   ;;  %s245_s20 = sadd.s32 1, %s2505_s15 }
   0x5   : > { %s242_s21 = ssub.s32 %s2509_s16, %s2598_s19  ;;  %p255_p0 = scmp.ne.s32.totalorder %s2505_s15, %s2501_s14 }
   0x6   : > { %p243_p1 = scmp.eq.s32.totalorder %s242_s21, 0  ;;  %p256_p2 = scmp.eq.s32.totalorder %s2594_s17, 1 }
   0x7   : > { %p261_p3 = scmp.ne.s32.totalorder %s2501_s14, %s2497_s13  ;;  %p262_p4 = scmp.eq.s32.totalorder %s2276_s18, 1 }
   0x8   : > { %s2609_s22 = scalar_select %p243_p1, %s2505_s15, %s245_s20  }
   0x9   : > { %p2611_p5 = por %p256_p2, %p255_p0  ;;  %p2615_p6 = por %p262_p4, %p261_p3 }
   0xa   : > { %p2279_p7 = scmp.ge.s32.totalorder %s2509_s16, 1  ;;  %p315_p8 = scmp.lt.s32.totalorder %s2509_s16, 3 }
   0xc   : > { %p316_p9 = pnand %p2279_p7, %p315_p8 }
   0xd   : > { %p353_p10 = scmp.lt.s32.totalorder (!%p316_p9), %s2594_s17, 1  ;;  %v2511_v0 = vmov (!%p316_p9), 0   ;;  %s2512_s30 = smov (!%p316_p9), 127   ;;  %v394_v3 = vlaneseq (!%p316_p9)  ;;  %v2285_v5 = vld [vmem:[%s3082_s1 + $0x3] ss:$4 sm:$0x3] (!%p316_p9) }
   0xe   : > { %319 = sbr.rel (%p316_p9) target bundleno = 1426 (0x592), region = 60  ;;  %2440 = vset.pattern.permute.xlu0 (!%p316_p9), %v2511_v0  ;;  %2441 = vset.pattern.permute.xlu1 (!%p316_p9), %v2511_v0  ;;  %s2513_s11 = smov (!%p316_p9), 1   ;;  %vm369_vm0 = vcmp.gt.f32.partialorder (!%p316_p9), %v2285_v5, 0.5  ;;  %v2515_v8 = vmov (!%p316_p9), 0.0   ;;  %vm377_vm4 = vcmask (!%p316_p9), 1039360   ;;  %vm388_vm5 = vcmask (!%p316_p9), 7168  }
   0xf   : > { %v395_v4 = vshrl.u32 (!%p316_p9), %v394_v3, 7  ;;  %s2514_s20 = smov (!%p316_p9), 16   ;;  %v454_v7 = vsel (!%p316_p9), %vm369_vm0, 1, %v2511_v0  ;;  %591 = vmatprep.mubr.f32.mxu0 (!%p316_p9), %v2515_v8  ;;  %1479 = vmatprep.mubr.f32.mxu1 (!%p316_p9), %v2515_v8  ;;  %s2516_s21 = smov (!%p316_p9), 112   ;;  %vm426_vm8 = vcmask (!%p316_p9), 130048   ;;  %vm435_vm11 = vcmask (!%p316_p9), 916480  }
  0x10   : > { %v359_v10 = vld [vmem:[%s3082_s1] ss:$4 sm:$0x3] (!%p316_p9)  ;;  %v2283_v12 = vld [vmem:[%s3082_s1 + $0x1] ss:$4 sm:$0x3] (!%p316_p9) }
  0x11   : > { %v396_v6 = vsub.s32 (!%p316_p9), 0, %v395_v4  ;;  %vm360_vm1 = vcmp.gt.f32.partialorder (!%p316_p9), %v359_v10, 0.5  ;;  %v400_v11 = vsub.s32 (!%p316_p9), 1, %v395_v4  ;;  %v2284_v14 = vld [vmem:[%s3082_s1 + $0x2] ss:$4 sm:$0x3] (!%p316_p9) }
  0x12   : > { %v393_v13 = vsel (!%p316_p9), %vm360_vm1, 1, %v2511_v0  ;;  %vm363_vm2 = vcmp.gt.f32.partialorder (!%p316_p9), %v2283_v12, 0.5  ;;  %vm366_vm3 = vcmp.gt.f32.partialorder (!%p316_p9), %v2284_v14, 0.5  ;;  %vm520_vm0 = vcmask (!%p316_p9), 1043456   ;;  %v2286_v56 = vld [vmem:[%s3083_s2 + $0x4] sm:$0xf] (!%p316_p9) }
  0x13   : > { %v458_v9 = vrot.slane (!%p316_p9), %v454_v7, %v396_v6  ;;  %v401_v16 = vrot.slane (!%p316_p9), %v393_v13, %v400_v11  ;;  %v397_v17 = vrot.slane (!%p316_p9), %v393_v13, %v396_v6  ;;  %v406_v19 = vsel (!%p316_p9), %vm363_vm2, 1, %v2511_v0  ;;  %v370_v57 = vld [vmem:[%s3084_s3] sm:$0xf] (!%p316_p9)  ;;  %v2332_v42 = vld [vmem:[%s3087_s6 + $0xc] sm:$0xf] (!%p316_p9)  ;;  %s350_s27 = sand.u32 (!%p316_p9), 1, %s2501_s14  }
  0x14   : > { %v441_v23 = vsel (!%p316_p9), %vm366_vm3, 1, %v2511_v0  ;;  %v414_v25 = vrot.slane (!%p316_p9), %v406_v19, %v400_v11  ;;  %v410_v32 = vrot.slane (!%p316_p9), %v406_v19, %v396_v6  ;;  %v462_v36 = vrot.slane (!%p316_p9), %v454_v7, %v400_v11  ;;  %v2297_v19 = vld [vmem:[%s3083_s2 + $0xc] sm:$0xf] (!%p316_p9)  ;;  %v2336_v45 = vld [vmem:[%s3087_s6 + $0x10] sm:$0xf] (!%p316_p9)  ;;  %s2280_s28 = sshll.u32 (!%p316_p9), %s350_s27, 3 }
  0x15   : > { %s354_s25 = scalar_select %p353_p10, %s2594_s17, 1  ;;  %vm2662_vm6 = vcmp.eq.s32.totalorder %v401_v16, 1  ;;  %vm2666_vm7 = vcmp.eq.s32.totalorder %v397_v17, 1  ;;  %v449_v34 = vrot.slane %v441_v23, %v400_v11  ;;  %v445_v35 = vrot.slane %v441_v23, %v396_v6  ;;  %v513_v6 = vld [vmem:[%s3083_s2] sm:$0xf] }
  0x16   : > { %vm2686_vm9 = vcmp.eq.s32.totalorder %v414_v25, 1  ;;  %vm2690_vm10 = vcmp.eq.s32.totalorder %v410_v32, 1  ;;  %vm2694_vm12 = vcmp.eq.s32.totalorder %v458_v9, 1  ;;  %vm2716_vm15 = vcmp.eq.s32.totalorder %v462_v36, 1  ;;  %v2352_v46 = vld [vmem:[%s3087_s6 + $0x20] sm:$0xf] }
  0x17   : > { %s2361_s26 = sshll.u32 %s354_s25, 3  ;;  %vm2698_vm13 = vcmp.eq.s32.totalorder %v449_v34, 1  ;;  %vm2712_vm14 = vcmp.eq.s32.totalorder %v445_v35, 1  ;;  %vm516_vm1 = vcmask 31744  }
  0x18   : > { %s357_s29 = scalar_lea.vmem %s3081_s0, %s2361_s26  ;;  %s2203_s26 = scalar_lea.sflag [#allocation3], %s350_s27 }
  0x19   : > { %v2626_v1 = vld [vmem:[%s357_s29] sm:$0xff] }
  0x1a   : > { %373 = vrot.lane.b32.xlu0 %v2626_v1, %s2512_s30  ;;  %v2632_v2 = vcombine.high %v2626_v1, %v2626_v1 }
  0x1c   : > { %383 = vrot.lane.b32.xlu1 %v2632_v2, %s2513_s11 }
  0x1e   : > { %375 = vrot.lane.b32.xlu0 %v2632_v2, %s2512_s30 }
  0x20   : > { %386 = vrot.lane.b32.xlu1 %v2626_v1, %s2513_s11 }
  0x22   : > { %467 = vrot.lane.b32.xlu0 %v2632_v2, %s2514_s20 }
  0x24   : > { %470 = vrot.lane.b32.xlu1 %v2626_v1, %s2514_s20 }
  0x26   : > { %476 = vrot.lane.b32.xlu0 %v2626_v1, %s2516_s21 }
  0x28   : > { %478 = vrot.lane.b32.xlu1 %v2632_v2, %s2516_s21 }
  0x8c   : > { %v374_v15 = vpop.permute.xlu0 %373 }
  0x8e   : > { %v384_v18 = vpop.permute.xlu1 %383 }
  0x90   : > { %v376_v20 = vpop.permute.xlu0 %375 }
  0x91   : > { %v378_v26 = vsel %vm377_vm4, %v374_v15, %v376_v20  ;;  %v382_v27 = vsel %vm377_vm4, %v376_v20, %v374_v15  ;;  %v2301_v20 = vld [vmem:[%s3083_s2 + $0x10] sm:$0xf] }
  0x92   : > { %v387_v24 = vpop.permute.xlu1 %386 }
  0x93   : > { %v389_v28 = vsel %vm388_vm5, %v387_v24, %v384_v18  ;;  %v392_v29 = vsel %vm388_vm5, %v384_v18, %v387_v24  ;;  %v2293_v18 = vld [vmem:[%s3083_s2 + $0x8] sm:$0xf]  ;;  %v2305_v24 = vld [vmem:[%s3083_s2 + $0x14] sm:$0xf] }
  0x94   : > { %v2676_v30 = vsel %vm2662_vm6, %v382_v27, %v389_v28  ;;  %v2680_v31 = vsel %vm2666_vm7, %v378_v26, %v392_v29  ;;  %v468_v33 = vpop.permute.xlu0 %467  ;;  %v418_v48 = vsel %vm2686_vm9, %v389_v28, %v382_v27  ;;  %v417_v49 = vsel %vm2690_vm10, %v392_v29, %v378_v26  ;;  %v2309_v26 = vld [vmem:[%s3083_s2 + $0x18] sm:$0xf]  ;;  %v2313_v28 = vld [vmem:[%s3083_s2 + $0x1c] sm:$0xf] }
  0x95   : > { %420 = vrot.lane.b32.xlu0 %v2676_v30, %s2514_s20  ;;  %424 = vrot.lane.b32.xlu1 %v2680_v31, %s2514_s20 }
  0x96   : > { %v471_v37 = vpop.permute.xlu1 %470 }
  0x97   : > { %v2707_v43 = vsel %vm426_vm8, %v471_v37, %v468_v33  ;;  %v2710_v44 = vsel %vm426_vm8, %v468_v33, %v471_v37 }
  0x98   : > { %v477_v41 = vpop.permute.xlu0 %476 }
  0x99   : > { %431 = vrot.lane.b32.xlu0 %v2680_v31, %s2516_s21  ;;  %433 = vrot.lane.b32.xlu1 %v2676_v30, %s2516_s21 }
  0x9a   : > { %v479_v47 = vpop.permute.xlu1 %478 }
  0x9b   : > { %v2725_v50 = vsel %vm435_vm11, %v477_v41, %v479_v47  ;;  %v2728_v51 = vsel %vm435_vm11, %v479_v47, %v477_v41 }
  0x9c   : > { %v487_v52 = vsel %vm2694_vm12, %v2710_v44, %v2725_v50  ;;  %v486_v53 = vsel %vm2698_vm13, %v2728_v51, %v2707_v43  ;;  %v485_v54 = vsel %vm2712_vm14, %v2725_v50, %v2710_v44  ;;  %v488_v55 = vsel %vm2716_vm15, %v2707_v43, %v2728_v51  ;;  %v1267_v50 = vld [vmem:[%s3085_s4] sm:$0xf] }
  0x9d   : > { %490 = vrot.lane.b32.xlu0 %v418_v48, %s2514_s20  ;;  %494 = vrot.lane.b32.xlu1 %v417_v49, %s2514_s20  ;;  %v1268_v51 = vld [vmem:[%s3086_s5] sm:$0xf] }
  0x9e   : > { %2287 = vmatprep.subr.msk.mxu0 %vm520_vm0, %v486_v53 }
  0x9f   : > { %2288 = vmatpush1.msk.msra.mxu0 %vm520_vm0, %v485_v54 }
  0xa0   : > { %2289 = vmatmul.mubr.msk.f32.vlgmr.msra.gmra.mrb[0].mxu0 %vm516_vm1, %v2286_v56 }
  0xa1   : > { %500 = vrot.lane.b32.xlu0 %v417_v49, %s2516_s21  ;;  %502 = vrot.lane.b32.xlu1 %v418_v48, %s2516_s21 }
  0xa2   : > { %671 = vmatprep.mubr.f32.mxu0 %v2515_v8 }
  0xa5   : > { %1262 = vperm.xlu0 %2440, %v370_v57  }
 0x107   : > { %v425_v58 = vpop.permute.xlu1 %424  ;;  %v421_v59 = vpop.permute.xlu0 %420 }
 0x108   : > { %v427_v62 = vsel %vm426_vm8, %v425_v58, %v421_v59  ;;  %v430_v63 = vsel %vm426_vm8, %v421_v59, %v425_v58 }
 0x10b   : > { %v434_v60 = vpop.permute.xlu1 %433  ;;  %v432_v61 = vpop.permute.xlu0 %431 }
 0x10c   : > { %v436_v0 = vsel %vm435_vm11, %v432_v61, %v434_v60  ;;  %v440_v3 = vsel %vm435_vm11, %v434_v60, %v432_v61 }
 0x10d   : > { %v452_v4 = vsel %vm2712_vm14, %v436_v0, %v430_v63  ;;  %v453_v5 = vsel %vm2698_vm13, %v440_v3, %v427_v62  ;;  %v466_v23 = vsel %vm2716_vm15, %v427_v62, %v440_v3  ;;  %v465_v25 = vsel %vm2694_vm12, %v430_v63, %v436_v0 }
 0x10e   : > { %2290 = vmatprep.subr.msk.mxu0 %vm520_vm0, %v453_v5 }
 0x10f   : > { %v495_v7 = vpop.permute.xlu1 %494  ;;  %2291 = vmatpush1.msk.msra.mxu0 %vm520_vm0, %v452_v4  ;;  %v491_v9 = vpop.permute.xlu0 %490 }
 0x110   : > { %2292 = vmatmul.mubr.msk.f32.vlgmr.msra.gmra.mrb[0].mxu0 %vm516_vm1, %v513_v6  ;;  %v496_v12 = vsel %vm426_vm8, %v495_v7, %v491_v9  ;;  %v499_v13 = vsel %vm426_vm8, %v491_v9, %v495_v7 }
 0x111   : > { %753 = vmatprep.mubr.f32.mxu0 %v2515_v8 }
 0x113   : > { %v503_v10 = vpop.permute.xlu1 %502  ;;  %v501_v11 = vpop.permute.xlu0 %500 }
 0x114   : > { %v504_v14 = vsel %vm435_vm11, %v501_v11, %v503_v10  ;;  %v508_v15 = vsel %vm435_vm11, %v503_v10, %v501_v11 }
 0x115   : > { %v509_v16 = vsel %vm2712_vm14, %v504_v14, %v499_v13  ;;  %v510_v17 = vsel %vm2698_vm13, %v508_v15, %v496_v12  ;;  %v512_v27 = vsel %vm2716_vm15, %v496_v12, %v508_v15  ;;  %v511_v29 = vsel %vm2694_vm12, %v499_v13, %v504_v14 }
 0x116   : > { %2294 = vmatprep.subr.msk.mxu0 %vm520_vm0, %v510_v17 }
 0x117   : > { %2295 = vmatpush1.msk.msra.mxu0 %vm520_vm0, %v509_v16 }
 0x118   : > { %2296 = vmatmul.mubr.msk.f32.vlgmr.msra.gmra.mrb[0].mxu0 %vm516_vm1, %v2293_v18  ;;  %2298 = vmatprep.subr.msk.mxu0 %vm520_vm0, %v2676_v30  ;;  %v2317_v30 = vld [vmem:[%s3083_s2 + $0x20] sm:$0xf] }
 0x119   : > { %2299 = vmatpush1.msk.msra.mxu0 %vm520_vm0, %v2680_v31  ;;  %835 = vmatprep.mubr.f32.mxu0 %v2515_v8 }
 0x11a   : > { %2302 = vmatprep.subr.msk.mxu0 %vm520_vm0, %v2632_v2 }
 0x120   : > { %2300 = vmatmul.mubr.msk.f32.vlgmr.msra.gmra.mrb[0].mxu0 %vm516_vm1, %v2297_v19 }
 0x121   : > { %2303 = vmatpush1.msk.msra.mxu0 %vm520_vm0, %v2626_v1  ;;  %917 = vmatprep.mubr.f32.mxu0 %v2515_v8 }
 0x122   : > { %2306 = vmatprep.subr.msk.mxu0 %vm520_vm0, %v418_v48 }
 0x124   : > { %v1263_v31 = vpop.permute.xlu0 %1262 }
 0x128   : > { %2304 = vmatmul.mubr.msk.f32.vlgmr.msra.gmra.mrb[0].mxu0 %vm516_vm1, %v2301_v20 }
 0x129   : > { %2307 = vmatpush1.msk.msra.mxu0 %vm520_vm0, %v417_v49  ;;  %999 = vmatprep.mubr.f32.mxu0 %v2515_v8 }
 0x12a   : > { %2310 = vmatprep.subr.msk.mxu0 %vm520_vm0, %v466_v23 }
 0x130   : > { %2308 = vmatmul.mubr.msk.f32.vlgmr.msra.gmra.mrb[0].mxu0 %vm516_vm1, %v2305_v24 }
 0x131   : > { %2311 = vmatpush1.msk.msra.mxu0 %vm520_vm0, %v465_v25  ;;  %1083 = vmatprep.mubr.f32.mxu0 %v2515_v8 }
 0x132   : > { %2314 = vmatprep.subr.msk.mxu0 %vm520_vm0, %v488_v55 }
 0x138   : > { %2312 = vmatmul.mubr.msk.f32.vlgmr.msra.gmra.mrb[0].mxu0 %vm516_vm1, %v2309_v26 }
 0x139   : > { %2315 = vmatpush1.msk.msra.mxu0 %vm520_vm0, %v487_v52  ;;  %1167 = vmatprep.mubr.f32.mxu0 %v2515_v8 }
 0x13a   : > { %2318 = vmatprep.subr.msk.mxu0 %vm520_vm0, %v512_v27 }
 0x140   : > { %2316 = vmatmul.mubr.msk.f32.vlgmr.msra.gmra.mrb[0].mxu0 %vm516_vm1, %v2313_v28 }
 0x141   : > { %2319 = vmatpush1.msk.msra.mxu0 %vm520_vm0, %v511_v29  ;;  %1251 = vmatprep.mubr.f32.mxu0 %v2515_v8 }
 0x148   : > { %2320 = vmatmul.mubr.msk.f32.vlgmr.msra.gmra.mrb[0].mxu0 %vm516_vm1, %v2317_v30 }
 0x21b   : > { %v1253_v32 = vpop.f32.mrb[0].mxu0 }
 0x21c   : > { %v1265_v33 = vadd.f32 %v1263_v31, %v1253_v32  ;;  %v1255_v34 = vpop.f32.mrb[1].mxu0 }
 0x21d   : > { %v1266_v35 = vadd.f32 %v1263_v31, %v1255_v34  ;;  %v2321_v34 = vld [vmem:[%s3087_s6 + $0x4] sm:$0xf] }
 0x21e   : > { %v1269_v36 = vsel %vm520_vm0, %v1265_v33, 0.0  ;;  %v1274_v37 = vmul.f32 %v1265_v33, %v1265_v33 }
 0x21f   : > { %v1270_v41 = vsel %vm520_vm0, %v1266_v35, 0.0  ;;  %v1275_v43 = vmul.f32 %v1266_v35, %v1266_v35 }
 0x220   : > { %v1271_v44 = vadd.f32 %v1270_v41, %v1269_v36  ;;  %v1276_v47 = vsel %vm520_vm0, %v1274_v37, 0.0 }
 0x221   : > { %v1277_v48 = vsel %vm520_vm0, %v1275_v43, 0.0 }
 0x222   : > { %1272 = vadd.xlane.f32.xlu1 %v1271_v44  ;;  %v1278_v49 = vadd.f32 %v1277_v48, %v1276_v47 }
 0x224   : > { %1279 = vadd.xlane.f32.xlu0 %v1278_v49 }
 0x233   : > { %1294 = vperm.xlu1 %2441, %v1267_v50  }
 0x23a   : > { %1301 = vperm.xlu0 %2440, %v1268_v51  }
 0x2af   : > { %v1273_v52 = vpop.xlane.xlu1 %1272 }
 0x2b0   : > { %v1281_v53 = vmul.f32 0.00390625, %v1273_v52  ;;  %v1403_v52 = vld [vmem:[%s3087_s6] sm:$0xf] }
 0x2b1   : > { %v1280_v54 = vpop.xlane.xlu0 %1279 }
 0x2b2   : > { %v1282_v55 = vmul.f32 0.00390625, %v1280_v54  ;;  %v1283_v56 = vmul.f32 %v1281_v53, %v1281_v53  ;;  %v1286_v60 = vsub.f32 %v1265_v33, %v1281_v53  ;;  %v1287_v61 = vsub.f32 %v1266_v35, %v1281_v53  ;;  %v1308_v35 = vld [vmem:[%s3088_s7] sm:$0xf] }
 0x2b3   : > { %v1295_v63 = vpop.permute.xlu1 %1294 }
 0x2b4   : > { %v1284_v57 = vsub.f32 %v1282_v55, %v1283_v56 }
 0x2b6   : > { %v1285_v58 = vmax.f32 %v1284_v57, 0.0 }
 0x2b8   : > { %v1288_v59 = vadd.f32 1e-05, %v1285_v58 }
 0x2b9   : > { %v1302_v6 = vpop.permute.xlu0 %1301 }
 0x2ba   : > { %2443 = vrsqrt.f32 %v1288_v59 }
 0x2c4   : > { %v2444_v62 = vpop.eup %2443 }
 0x2c5   : > { %v1290_v0 = vmul.f32 %v2444_v62, %v1286_v60  ;;  %v1291_v3 = vmul.f32 %v2444_v62, %v1287_v61 }
 0x2c7   : > { %v1297_v4 = vmul.f32 %v1295_v63, %v1290_v0  ;;  %v1298_v5 = vmul.f32 %v1295_v63, %v1291_v3  ;;  %v2328_v63 = vld [vmem:[%s3087_s6 + $0x8] sm:$0xf]  ;;  %v2340_v3 = vld [vmem:[%s3087_s6 + $0x14] sm:$0xf] }
 0x2c9   : > { %v1304_v7 = vadd.f32 %v1302_v6, %v1297_v4  ;;  %v1305_v9 = vadd.f32 %v1302_v6, %v1298_v5  ;;  %v2344_v5 = vld [vmem:[%s3087_s6 + $0x18] sm:$0xf] }
 0x2cb   : > { %v2858_v10 = vmax.f32 %v1304_v7, 0.0  ;;  %v2860_v11 = vmax.f32 %v1305_v9, 0.0  ;;  %v2348_v7 = vld [vmem:[%s3087_s6 + $0x1c] sm:$0xf] }
 0x2cd   : > { %1320 = vrot.lane.b32.xlu0 %v2860_v11, %s2513_s11  ;;  %1311 = vrot.lane.b32.xlu1 %v2858_v10, %s2512_s30 }
 0x2d1   : > { %1357 = vrot.lane.b32.xlu0 %v2860_v11, %s2514_s20  ;;  %1313 = vrot.lane.b32.xlu1 %v2860_v11, %s2512_s30  ;;  %s2517_s30 = smov [#allocation2]  }
 0x2d5   : > { %1366 = vrot.lane.b32.xlu0 %v2858_v10, %s2516_s21  ;;  %1323 = vrot.lane.b32.xlu1 %v2858_v10, %s2513_s11  ;;  %s2451_s11 = sshll.u32 %s2517_s30, 4  ;;  %s2452_s11 = int_to_ptr.vmem [resolvable:$false] %s2451_s11 }
 0x2d9   : > { %1360 = vrot.lane.b32.xlu1 %v2858_v10, %s2514_s20 }
 0x2dd   : > { %1368 = vrot.lane.b32.xlu1 %v2860_v11, %s2516_s21 }
 0x33f   : > { %v1312_v12 = vpop.permute.xlu1 %1311  ;;  %v1321_v13 = vpop.permute.xlu0 %1320 }
 0x343   : > { %v1314_v14 = vpop.permute.xlu1 %1313  ;;  %v1358_v20 = vpop.permute.xlu0 %1357 }
 0x344   : > { %v1315_v16 = vsel %vm377_vm4, %v1312_v12, %v1314_v14  ;;  %v1319_v17 = vsel %vm377_vm4, %v1314_v14, %v1312_v12 }
 0x347   : > { %v1324_v15 = vpop.permute.xlu1 %1323  ;;  %v1367_v26 = vpop.permute.xlu0 %1366 }
 0x348   : > { %v1325_v18 = vsel %vm388_vm5, %v1324_v15, %v1321_v13  ;;  %v1328_v19 = vsel %vm388_vm5, %v1321_v13, %v1324_v15 }
 0x349   : > { %v1329_v23 = vsel %vm2666_vm7, %v1315_v16, %v1328_v19  ;;  %v1330_v24 = vsel %vm2662_vm6, %v1319_v17, %v1325_v18  ;;  %v1331_v28 = vsel %vm2690_vm10, %v1328_v19, %v1315_v16  ;;  %v1332_v22 = vsel %vm2686_vm9, %v1325_v18, %v1319_v17 }
 0x34a   : > { %1338 = vrot.lane.b32.xlu1 %v1329_v23, %s2514_s20  ;;  %1334 = vrot.lane.b32.xlu0 %v1330_v24, %s2514_s20 }
 0x34b   : > { %v1361_v25 = vpop.permute.xlu1 %1360 }
 0x34c   : > { %v2895_v21 = vsel %vm426_vm8, %v1361_v25, %v1358_v20  ;;  %v2898_v29 = vsel %vm426_vm8, %v1358_v20, %v1361_v25 }
 0x34e   : > { %1346 = vrot.lane.b32.xlu1 %v1330_v24, %s2516_s21  ;;  %1344 = vrot.lane.b32.xlu0 %v1329_v23, %s2516_s21 }
 0x34f   : > { %v1369_v27 = vpop.permute.xlu1 %1368 }
 0x350   : > { %v2901_v30 = vsel %vm435_vm11, %v1367_v26, %v1369_v27  ;;  %v2904_v31 = vsel %vm435_vm11, %v1369_v27, %v1367_v26 }
 0x351   : > { %v1377_v39 = vsel %vm2694_vm12, %v2898_v29, %v2901_v30  ;;  %v1376_v38 = vsel %vm2698_vm13, %v2904_v31, %v2895_v21  ;;  %v1375_v32 = vsel %vm2712_vm14, %v2901_v30, %v2898_v29  ;;  %v1378_v33 = vsel %vm2716_vm15, %v2895_v21, %v2904_v31 }
 0x352   : > { %1384 = vrot.lane.b32.xlu1 %v1331_v28, %s2514_s20  ;;  %1380 = vrot.lane.b32.xlu0 %v1332_v22, %s2514_s20  ;;  %s2362_s20 = sshll.u32 %s2594_s17, 7 }
 0x353   : > { %2322 = vmatprep.subr.msk.mxu1 %vm520_vm0, %v1376_v38  ;;  %s3039_s25 = scalar_lea.hbm %s3091_s10, %s2362_s20 }
 0x354   : > { %2323 = vmatpush1.msk.msra.mxu1 %vm520_vm0, %v1375_v32 }
 0x355   : > { %2324 = vmatmul.mubr.msk.f32.vlgmr.msra.gmra.mrb[0].mxu1 %vm516_vm1, %v2321_v34 }
 0x356   : > { %1392 = vrot.lane.b32.xlu1 %v1332_v22, %s2516_s21  ;;  %1390 = vrot.lane.b32.xlu0 %v1331_v28, %s2516_s21  ;;  %s352_s21 = scalar_lea.vmem [#allocation2], %s2280_s28  ;;  %s2453_s28 = scalar_lea.vmem %s2452_s11, 256 }
 0x357   : > { %1559 = vmatprep.mubr.f32.mxu1 %v2515_v8  ;;  %s2217_s29 = sshll.u32 %s352_s21, 4  ;;  %s3041_s29 = int_to_ptr.vmem [resolvable:$true] %s2217_s29 }
 0x358   : > { %s2447_s17 = scalar_lea.vmem %s3041_s29, 128  ;;  %p2454_p0 = scmp.lt.s32.totalorder %s3041_s29, %s2452_s11 }
 0x359   : > { %p2448_p11 = scmp.ne.s32.totalorder %s3041_s29, %s2447_s17  ;;  %p2455_p1 = scmp.lt.s32.totalorder %s2453_s28, %s2447_s17 }
 0x35a   : > { %2150 = vperm.xlu0 %2440, %v1308_v35  }
 0x35b   : > { %p2449_p12 = pnand %p2448_p11, %p2611_p5  ;;  %p2456_p2 = por %p2455_p1, %p2454_p0 }
 0x35d   : > { %p2450_p13 = pneg %p2449_p12 }
 0x35f   : > { %p2457_p3 = pnand %p2456_p2, %p2450_p13 }
 0x3bc   : > { %v1335_v36 = vpop.permute.xlu0 %1334  ;;  %v1339_v37 = vpop.permute.xlu1 %1338 }
 0x3bd   : > { %v1340_v44 = vsel %vm426_vm8, %v1339_v37, %v1335_v36  ;;  %v1343_v47 = vsel %vm426_vm8, %v1335_v36, %v1339_v37 }
 0x3c0   : > { %v1345_v41 = vpop.permute.xlu0 %1344  ;;  %v1347_v43 = vpop.permute.xlu1 %1346 }
 0x3c1   : > { %v1348_v48 = vsel %vm435_vm11, %v1345_v41, %v1347_v43  ;;  %v1352_v49 = vsel %vm435_vm11, %v1347_v43, %v1345_v41 }
 0x3c2   : > { %v1353_v50 = vsel %vm2712_vm14, %v1348_v48, %v1343_v47  ;;  %v1354_v51 = vsel %vm2698_vm13, %v1352_v49, %v1340_v44  ;;  %v1356_v0 = vsel %vm2716_vm15, %v1340_v44, %v1352_v49  ;;  %v1355_v4 = vsel %vm2694_vm12, %v1343_v47, %v1348_v48 }
 0x3c3   : > { %2325 = vmatprep.subr.msk.mxu1 %vm520_vm0, %v1354_v51 }
 0x3c4   : > { %v1381_v53 = vpop.permute.xlu0 %1380  ;;  %2326 = vmatpush1.msk.msra.mxu1 %vm520_vm0, %v1353_v50  ;;  %v1385_v54 = vpop.permute.xlu1 %1384 }
 0x3c5   : > { %2327 = vmatmul.mubr.msk.f32.vlgmr.msra.gmra.mrb[0].mxu1 %vm516_vm1, %v1403_v52  ;;  %v1386_v57 = vsel %vm426_vm8, %v1385_v54, %v1381_v53  ;;  %v1389_v58 = vsel %vm426_vm8, %v1381_v53, %v1385_v54 }
 0x3c6   : > { %1641 = vmatprep.mubr.f32.mxu1 %v2515_v8 }
 0x3c8   : > { %v1391_v55 = vpop.permute.xlu0 %1390  ;;  %v1393_v56 = vpop.permute.xlu1 %1392 }
 0x3c9   : > { %v1394_v59 = vsel %vm435_vm11, %v1391_v55, %v1393_v56  ;;  %v1398_v60 = vsel %vm435_vm11, %v1393_v56, %v1391_v55 }
 0x3ca   : > { %v1399_v61 = vsel %vm2712_vm14, %v1394_v59, %v1389_v58  ;;  %v1400_v62 = vsel %vm2698_vm13, %v1398_v60, %v1386_v57  ;;  %v1402_v6 = vsel %vm2716_vm15, %v1386_v57, %v1398_v60  ;;  %v1401_v9 = vsel %vm2694_vm12, %v1389_v58, %v1394_v59 }
 0x3cb   : > { %2329 = vmatprep.subr.msk.mxu1 %vm520_vm0, %v1400_v62 }
 0x3cc   : > { %2330 = vmatpush1.msk.msra.mxu1 %vm520_vm0, %v1399_v61 }
 0x3cd   : > { %2331 = vmatmul.mubr.msk.f32.vlgmr.msra.gmra.mrb[0].mxu1 %vm516_vm1, %v2328_v63  ;;  %2333 = vmatprep.subr.msk.mxu1 %vm520_vm0, %v1330_v24  ;;  %v2155_v24 = vld [vmem:[%s3089_s8] sm:$0xf] }
 0x3ce   : > { %2334 = vmatpush1.msk.msra.mxu1 %vm520_vm0, %v1329_v23  ;;  %1723 = vmatprep.mubr.f32.mxu1 %v2515_v8  ;;  %v2156_v23 = vld [vmem:[%s3090_s9] sm:$0xf] }
 0x3cf   : > { %2337 = vmatprep.subr.msk.mxu1 %vm520_vm0, %v2860_v11 }
 0x3d5   : > { %2335 = vmatmul.mubr.msk.f32.vlgmr.msra.gmra.mrb[0].mxu1 %vm516_vm1, %v2332_v42 }
 0x3d6   : > { %2338 = vmatpush1.msk.msra.mxu1 %vm520_vm0, %v2858_v10  ;;  %1805 = vmatprep.mubr.f32.mxu1 %v2515_v8 }
 0x3d7   : > { %2341 = vmatprep.subr.msk.mxu1 %vm520_vm0, %v1332_v22 }
 0x3d9   : > { %v2151_v10 = vpop.permute.xlu0 %2150 }
 0x3dd   : > { %2339 = vmatmul.mubr.msk.f32.vlgmr.msra.gmra.mrb[0].mxu1 %vm516_vm1, %v2336_v45 }
 0x3de   : > { %2342 = vmatpush1.msk.msra.mxu1 %vm520_vm0, %v1331_v28  ;;  %1887 = vmatprep.mubr.f32.mxu1 %v2515_v8 }
 0x3df   : > { %2345 = vmatprep.subr.msk.mxu1 %vm520_vm0, %v1356_v0 }
 0x3e5   : > { %2343 = vmatmul.mubr.msk.f32.vlgmr.msra.gmra.mrb[0].mxu1 %vm516_vm1, %v2340_v3 }
 0x3e6   : > { %2346 = vmatpush1.msk.msra.mxu1 %vm520_vm0, %v1355_v4  ;;  %1971 = vmatprep.mubr.f32.mxu1 %v2515_v8 }
 0x3e7   : > { %2349 = vmatprep.subr.msk.mxu1 %vm520_vm0, %v1378_v33 }
 0x3ed   : > { %2347 = vmatmul.mubr.msk.f32.vlgmr.msra.gmra.mrb[0].mxu1 %vm516_vm1, %v2344_v5 }
 0x3ee   : > { %2350 = vmatpush1.msk.msra.mxu1 %vm520_vm0, %v1377_v39  ;;  %2055 = vmatprep.mubr.f32.mxu1 %v2515_v8 }
 0x3ef   : > { %2353 = vmatprep.subr.msk.mxu1 %vm520_vm0, %v1402_v6 }
 0x3f5   : > { %2351 = vmatmul.mubr.msk.f32.vlgmr.msra.gmra.mrb[0].mxu1 %vm516_vm1, %v2348_v7 }
 0x3f6   : > { %2354 = vmatpush1.msk.msra.mxu1 %vm520_vm0, %v1401_v9  ;;  %2139 = vmatprep.mubr.f32.mxu1 %v2515_v8 }
 0x3fd   : > { %2355 = vmatmul.mubr.msk.f32.vlgmr.msra.gmra.mrb[0].mxu1 %vm516_vm1, %v2352_v46 }
 0x4d0   : > { %v2141_v11 = vpop.f32.mrb[0].mxu1 }
 0x4d1   : > { %v2153_v12 = vadd.f32 %v2151_v10, %v2141_v11  ;;  %v2143_v13 = vpop.f32.mrb[1].mxu1 }
 0x4d2   : > { %v2154_v14 = vadd.f32 %v2151_v10, %v2143_v13 }
 0x4d3   : > { %v2157_v40 = vsel %vm520_vm0, %v2153_v12, 0.0  ;;  %v2162_v15 = vmul.f32 %v2153_v12, %v2153_v12 }
 0x4d4   : > { %v2158_v16 = vsel %vm520_vm0, %v2154_v14, 0.0  ;;  %v2163_v17 = vmul.f32 %v2154_v14, %v2154_v14 }
 0x4d5   : > { %v2159_v18 = vadd.f32 %v2158_v16, %v2157_v40  ;;  %v2164_v8 = vsel %vm520_vm0, %v2162_v15, 0.0 }
 0x4d6   : > { %v2165_v19 = vsel %vm520_vm0, %v2163_v17, 0.0 }
 0x4d7   : > { %2160 = vadd.xlane.f32.xlu1 %v2159_v18  ;;  %v2166_v20 = vadd.f32 %v2165_v19, %v2164_v8 }
 0x4d9   : > { %2167 = vadd.xlane.f32.xlu0 %v2166_v20 }
 0x4e8   : > { %2189 = vperm.xlu1 %2441, %v2156_v23  }
 0x4ef   : > { %2182 = vperm.xlu0 %2440, %v2155_v24  }
 0x564   : > { %v2161_v25 = vpop.xlane.xlu1 %2160 }
 0x565   : > { %v2169_v26 = vmul.f32 0.00390625, %v2161_v25 }
 0x566   : > { %v2168_v27 = vpop.xlane.xlu0 %2167 }
 0x567   : > { %v2170_v28 = vmul.f32 0.00390625, %v2168_v27  ;;  %v2171_v22 = vmul.f32 %v2169_v26, %v2169_v26  ;;  %v2174_v31 = vsub.f32 %v2153_v12, %v2169_v26  ;;  %v2175_v39 = vsub.f32 %v2154_v14, %v2169_v26 }
 0x568   : > { %v2190_v37 = vpop.permute.xlu1 %2189 }
 0x569   : > { %v2172_v21 = vsub.f32 %v2170_v28, %v2171_v22 }
 0x56b   : > { %v2173_v29 = vmax.f32 %v2172_v21, 0.0 }
 0x56d   : > { %v2176_v30 = vadd.f32 1e-05, %v2173_v29 }
 0x56e   : > { %v2183_v34 = vpop.permute.xlu0 %2182 }
 0x56f   : > { %2445 = vrsqrt.f32 %v2176_v30 }
 0x579   : > { %v2446_v38 = vpop.eup %2445 }
 0x57a   : > { %v2178_v32 = vmul.f32 %v2446_v38, %v2174_v31  ;;  %v2179_v33 = vmul.f32 %v2446_v38, %v2175_v39 }
 0x57c   : > { %v2185_v35 = vmul.f32 %v2183_v34, %v2178_v32  ;;  %v2186_v36 = vmul.f32 %v2183_v34, %v2179_v33 }
 0x57e   : > { %v2192_v41 = vadd.f32 %v2190_v37, %v2185_v35  ;;  %v2193_v43 = vadd.f32 %v2190_v37, %v2186_v36 }
 0x580   : > { %v2195_v44 = vadd.f32 %v2192_v41, %v2626_v1  ;;  %v2196_v47 = vadd.f32 %v2193_v43, %v2632_v2 }
 0x582   : > { %v2199_v48 = vcombine.low %v2195_v44, %v2196_v47 }
 0x584   : > { %2201 = vst [vmem:[%s352_s21] sm:$0xff] %v2199_v48 }
 0x585   : > { %2460 = shalt.err (!%p2457_p3)
}
 0x586   : > { %s2461_s27 = scalar_lea.hbm %s3039_s25, 128  ;;  %s2465_s12 = scalar_lea.hbm %s3091_s10, 256 }
 0x587   : > { %p2462_p4 = scmp.ne.s32.totalorder %s3039_s25, %s2461_s27  ;;  %p2466_p9 = scmp.lt.u32.totalorder %s3039_s25, %s3091_s10 }
 0x588   : > { %p2467_p10 = scmp.lt.u32.totalorder %s2465_s12, %s2461_s27  ;;  %p2469_p12 = scmp.lt.u32.totalorder %s2461_s27, %s3039_s25 }
 0x589   : > { %p2463_p7 = pnand %p2462_p4, %p2611_p5 }
 0x58a   : > { %p2468_p11 = por %p2467_p10, %p2466_p9 }
 0x58b   : > { %p2464_p8 = pneg %p2463_p7 }
 0x58c   : > { %p2470_p13 = por %p2469_p12, %p2468_p11 }
 0x58e   : > { %p2471_p0 = pnand %p2470_p13, %p2464_p8 }
 0x590   : > { %2474 = shalt.err (!%p2471_p0)
}
 0x591   : > { %2395 = dma.vmem_to_hbm [thread:$0]  (%p2611_p5), %s3041_s29, 128, %s3039_s25, %s2203_s26  }
 0x592 PF: > { %p2401_p1 = scmp.ge.s32.totalorder %s2509_s16, 2  ;;  %s2229_s17 = sand.u32 1, %s2497_s13  }
 0x593   : > { %s2230_s11 = scalar_lea.sflag [#allocation3], %s2229_s17 }
 0x594   : > { %p2398_p2 = pnand %p2401_p1, %p2615_p6 }
 0x596   : > { %2492 = dma.done.wait (!%p2398_p2), %s2230_s11, 128  }
 0x597   : > { %2494 = vsyncadd (!%p2398_p2), %s2230_s11, 4294967168  ;;  %p20_p3 = scmp.ge.s32.totalorder %s2598_s19, 4   ;;  %s3110_s13 = smov %s2501_s14 }
 0x598   : > { %s3111_s14 = smov %s2505_s15  ;;  %s3112_s15 = smov %s2609_s22 }
 0x599   : > { %s3113_s16 = smov %s2598_s19  ;;  %22 = sbr.rel (!%p20_p3) target bundleno = 3 (0x3), region = 114 }
 0x5a0   :  { %2235 = vsyncpa [#allocation3], 1 }
 0x5a1   :  { %2237 = vsyncpa [#allocation3 + $0x1], 1 }

</bundles_post_ra>
